<compile_context>
chip_gen: v6e
topology: v6e:2x2x1
jax: 0.10.0
libtpu: 0.0.40
codegen_flags: <defaults>
</compile_context>

<pallas_src>
import jax
import jax.numpy as jnp
from jax.experimental import pallas as pl
from jax.experimental.pallas import tpu as pltpu

_NEG_SLOPE = 0.01   # torch.nn.functional.leaky_relu default
_LANE = 128
_SUBLANE = 8


def _round_up(x, m):
    return ((x + m - 1) // m) * m


def _leaky_relu(x):
    return jnp.where(x >= 0, x, _NEG_SLOPE * x)


# ----------------------------------------------------------------------------
# Kernel 1: per-layer feature transform  XW = x @ W   (row-tiled, lane-dense)
# ----------------------------------------------------------------------------
def _xw_kernel(x_ref, w_ref, o_ref):
    xw = jnp.dot(x_ref[...], w_ref[...], preferred_element_type=jnp.float32)
    o_ref[...] = xw.astype(o_ref.dtype)


def xw_pallas(x_pad, w_pad, *, tile_m):
    n_pad, f_in = x_pad.shape
    f_out = w_pad.shape[1]
    return pl.pallas_call(
        _xw_kernel,
        out_shape=jax.ShapeDtypeStruct((n_pad, f_out), jnp.bfloat16),
        grid=(n_pad // tile_m,),
        in_specs=[
            pl.BlockSpec((tile_m, f_in), lambda i: (i, 0)),
            pl.BlockSpec((f_in, f_out), lambda i: (0, 0)),
        ],
        out_specs=pl.BlockSpec((tile_m, f_out), lambda i: (i, 0)),
        compiler_params=pltpu.CompilerParams(
            dimension_semantics=("parallel",)),
    )(x_pad, w_pad)


# ----------------------------------------------------------------------------
# Kernel 2: aggregation  out = leaky_relu(A @ XW)
#   grid = (row tiles [parallel], contraction tiles over A columns [arbitrary])
#   f32 accumulator in VMEM scratch, zero-init at k==0, activate+store at k==last.
# ----------------------------------------------------------------------------
def _agg_kernel(a_ref, xw_ref, o_ref, acc_ref):
    k = pl.program_id(1)

    @pl.when(k == 0)
    def _():
        acc_ref[...] = jnp.zeros_like(acc_ref)

    acc_ref[...] += jnp.dot(a_ref[...], xw_ref[...],
                            preferred_element_type=jnp.float32)

    @pl.when(k == pl.num_programs(1) - 1)
    def _():
        o_ref[...] = _leaky_relu(acc_ref[...]).astype(o_ref.dtype)


def gcn_aggregate_pallas(a_pad, xw_pad, *, tile_m, tile_k, out_dtype):
    n_pad = a_pad.shape[0]
    f_out = xw_pad.shape[1]
    return pl.pallas_call(
        _agg_kernel,
        out_shape=jax.ShapeDtypeStruct((n_pad, f_out), out_dtype),
        grid=(n_pad // tile_m, n_pad // tile_k),
        in_specs=[
            pl.BlockSpec((tile_m, tile_k), lambda i, k: (i, k)),
            pl.BlockSpec((tile_k, f_out), lambda i, k: (k, 0)),
        ],
        out_specs=pl.BlockSpec((tile_m, f_out), lambda i, k: (i, 0)),
        scratch_shapes=[pltpu.VMEM((tile_m, f_out), jnp.float32)],
        compiler_params=pltpu.CompilerParams(
            dimension_semantics=("parallel", "arbitrary")),
    )(a_pad, xw_pad)


# ----------------------------------------------------------------------------
# Kernel 3: fully fused layer stack (used when padded A + buffers fit VMEM).
# Reads A from HBM exactly once for the whole forward pass.
# ----------------------------------------------------------------------------
def _make_fused_kernel(num_layers):
    def kernel(a_ref, x_ref, *rest):
        w_refs = rest[:num_layers]
        o_ref = rest[num_layers]
        a = a_ref[...]                      # bf16 [N_pad, N_pad]
        h = x_ref[...]                      # bf16 [N_pad, F0_pad]
        for layer in range(num_layers):
            xw = jnp.dot(h, w_refs[layer][...],
                         preferred_element_type=jnp.float32)
            agg = jnp.dot(a, xw.astype(jnp.bfloat16),
                          preferred_element_type=jnp.float32)
            act = _leaky_relu(agg)
            if layer + 1 < num_layers:
                h = act.astype(jnp.bfloat16)
            else:
                o_ref[...] = act.astype(o_ref.dtype)
    return kernel


def gcn_fused_stack_pallas(a_pad, x_pad, w_pads, *, vmem_bytes_hint=None):
    num_layers = len(w_pads)
    n_pad = a_pad.shape[0]
    f_out = w_pads[-1].shape[1]

    in_specs = [
        pl.BlockSpec(a_pad.shape, lambda i: (0, 0)),
        pl.BlockSpec(x_pad.shape, lambda i: (0, 0)),
    ]
    for w in w_pads:
        in_specs.append(pl.BlockSpec(w.shape, lambda i: (0, 0)))

    cp_kwargs = {"dimension_semantics": ("arbitrary",)}
    if vmem_bytes_hint is not None and vmem_bytes_hint > 24 * 1024 * 1024:
        cp_kwargs["vmem_limit_bytes"] = min(int(vmem_bytes_hint * 2),
                                            96 * 1024 * 1024)

    return pl.pallas_call(
        _make_fused_kernel(num_layers),
        out_shape=jax.ShapeDtypeStruct((n_pad, f_out), jnp.float32),
        grid=(1,),
        in_specs=in_specs,
        out_specs=pl.BlockSpec((n_pad, f_out), lambda i: (0, 0)),
        compiler_params=pltpu.CompilerParams(**cp_kwargs),
    )(a_pad, x_pad, *w_pads)


# ----------------------------------------------------------------------------
# Wrapper-side helpers
# ----------------------------------------------------------------------------
def build_dense_adj(edge_index, edge_w, num_nodes):
    """Densify edge list: A[tgt, src] = sum of edge weights (1.0 if None).

    Accumulated in f32; cast to bf16 happens after padding (so duplicate edges
    are summed at full precision).
    """
    src = edge_index[0]
    tgt = edge_index[1]
    if edge_w is None:
        edge_w = jnp.ones((edge_index.shape[1],), dtype=jnp.float32)
    a = jnp.zeros((num_nodes, num_nodes), dtype=jnp.float32)
    a = a.at[tgt, src].add(edge_w.astype(jnp.float32))
    return a


def _choose_tiles(n):
    """Row tile (targets) and contraction tile (sources) over the adjacency."""
    if n <= 512:
        n_pad = _round_up(n, _SUBLANE)
        return n_pad, n_pad, n_pad           # single block per axis
    n_pad = _round_up(n, 256)
    return n_pad, 256, 256                   # bounded per-step VMEM (v7x-safe)


class BackbonePallas:
    """Mirrors network/rd_net.py::Backbone (GCNConv stack, normalize=False, bias=False)."""

    def __init__(self, in_size, out_size, hide_size_list, key):
        self.size_list = [in_size] + list(hide_size_list) + [out_size]
        self.weights = []        # f32, unpadded (source of truth / reference)
        for i in range(len(self.size_list) - 1):
            key, sub = jax.random.split(key)
            fan_in, fan_out = self.size_list[i], self.size_list[i + 1]
            limit = (6.0 / (fan_in + fan_out)) ** 0.5   # glorot (as in PyG GCNConv)
            w = jax.random.uniform(sub, (fan_in, fan_out),
                                   minval=-limit, maxval=limit,
                                   dtype=jnp.float32)
            self.weights.append(w)

        # Lane-pad every layer's in/out feature dim to a multiple of 128 and
        # cast to bf16 (zero-padding keeps the math identical).
        self.padded_dims = [_round_up(s, _LANE) for s in self.size_list]
        self.weights_padded = []
        for i, w in enumerate(self.weights):
            fi, fo = self.padded_dims[i], self.padded_dims[i + 1]
            wp = jnp.pad(w, ((0, fi - w.shape[0]), (0, fo - w.shape[1])))
            self.weights_padded.append(wp.astype(jnp.bfloat16))

    def __call__(self, x, edge_index, edge_w=None, force_tiled=False):
        n = x.shape[0]
        out_size = self.size_list[-1]
        n_pad, tile_m, tile_k = _choose_tiles(n)

        a = build_dense_adj(edge_index, edge_w, n)
        a_pad = jnp.pad(a, ((0, n_pad - n), (0, n_pad - n))).astype(jnp.bfloat16)
        x_pad = jnp.pad(
            x.astype(jnp.float32),
            ((0, n_pad - n), (0, self.padded_dims[0] - x.shape[1])),
        ).astype(jnp.bfloat16)

        # Rough VMEM estimate for the fused path (A + a few activation slabs + W).
        max_f = max(self.padded_dims)
        est_bytes = (n_pad * n_pad * 2
                     + 4 * n_pad * max_f * 4
                     + sum(int(w.size) * 2 for w in self.weights_padded))
        use_fused = (not force_tiled) and est_bytes <= 40 * 1024 * 1024

        if use_fused:
            out_pad = gcn_fused_stack_pallas(
                a_pad, x_pad, self.weights_padded, vmem_bytes_hint=est_bytes)
        else:
            h = x_pad
            num_layers = len(self.weights_padded)
            for li, w in enumerate(self.weights_padded):
                xw = xw_pallas(h, w, tile_m=tile_m)
                last = li == num_layers - 1
                h = gcn_aggregate_pallas(
                    a_pad, xw, tile_m=tile_m, tile_k=tile_k,
                    out_dtype=jnp.float32 if last else jnp.bfloat16)
            out_pad = h

        return out_pad[:n, :out_size].astype(jnp.float32)


def reference_forward(weights, x, edge_index, edge_w):
    """Pure-JAX f32 reference: leaky_relu(A @ (x @ W)) per layer."""
    n = x.shape[0]
    a = build_dense_adj(edge_index, edge_w, n)
    h = x.astype(jnp.float32)
    for w in weights:
        h = _leaky_relu(a @ (h @ w))
    return h


if __name__ == "__main__":
    key = jax.random.PRNGKey(0)
    k_x, k_src, k_tgt, k_w, k_params = jax.random.split(key, 5)

    num_nodes = 8
    in_size = 4
    hide_size_list = [32, 16]
    out_size = 8
    num_edges = 16

    x = jax.random.normal(k_x, (num_nodes, in_size), dtype=jnp.float32)
    src = jax.random.randint(k_src, (num_edges,), 0, num_nodes)
    tgt = jax.random.randint(k_tgt, (num_edges,), 0, num_nodes)
    edge_index = jnp.stack([src, tgt], axis=0)  # [2, E]
    edge_w = jax.random.uniform(k_w, (num_edges,), dtype=jnp.float32)

    model = BackbonePallas(in_size, out_size, hide_size_list, k_params)

    # Fused single-call path (auto-selected for small graphs).
    out_fused = jax.block_until_ready(model(x, edge_index, edge_w))
    # Tiled per-layer path (what large graphs use) — exercised for coverage.
    out_tiled = jax.block_until_ready(model(x, edge_index, edge_w,
                                            force_tiled=True))
    ref = jax.block_until_ready(
        reference_forward(model.weights, x, edge_index, edge_w))

    assert out_fused.shape == (num_nodes, out_size)
    assert out_tiled.shape == (num_nodes, out_size)

    scale = float(jnp.max(jnp.abs(ref))) + 1e-6
    # bf16 operands vs f32 reference -> allow a small relative tolerance.
    assert float(jnp.max(jnp.abs(out_fused - ref))) / scale < 0.1
    assert float(jnp.max(jnp.abs(out_tiled - ref))) / scale < 0.1
    # Both Pallas paths follow the same bf16/f32 cast sequence.
    assert float(jnp.max(jnp.abs(out_fused - out_tiled))) < 2e-2 * scale + 1e-3

    print("KERNEL_OK")
</pallas_src>

<mosaic_0001>
module attributes {stable_mosaic.version = 11 : i64} {
  func.func @kernel(%arg0: i32, %arg1: memref<8x8xbf16, #tpu.memory_space<vmem>>, %arg2: memref<8x128xbf16, #tpu.memory_space<vmem>>, %arg3: memref<128x128xbf16, #tpu.memory_space<vmem>>, %arg4: memref<128x128xbf16, #tpu.memory_space<vmem>>, %arg5: memref<128x128xbf16, #tpu.memory_space<vmem>>, %arg6: memref<8x128xf32, #tpu.memory_space<vmem>>) attributes {dimension_semantics = [#tpu.dimension_semantics<arbitrary>], iteration_bounds = array<i64: 1>, scalar_prefetch = 0 : i64, scratch_operands = 0 : i64, tpu.core_type = #tpu.core_type<tc>, window_params = [{pipeline_mode = #tpu.pipeline_mode<synchronous>, transform_indices = @transform_0, window_bounds = array<i64: 8, 8>}, {pipeline_mode = #tpu.pipeline_mode<synchronous>, transform_indices = @transform_1, window_bounds = array<i64: 8, 128>}, {pipeline_mode = #tpu.pipeline_mode<synchronous>, transform_indices = @transform_2, window_bounds = array<i64: 128, 128>}, {pipeline_mode = #tpu.pipeline_mode<synchronous>, transform_indices = @transform_3, window_bounds = array<i64: 128, 128>}, {pipeline_mode = #tpu.pipeline_mode<synchronous>, transform_indices = @transform_4, window_bounds = array<i64: 128, 128>}, {pipeline_mode = #tpu.pipeline_mode<synchronous>, transform_indices = @transform_5, window_bounds = array<i64: 8, 128>}]} {
    %c0 = arith.constant 0 : index
    %c0_0 = arith.constant 0 : index
    %0 = vector.load %arg1[%c0, %c0_0] : memref<8x8xbf16, #tpu.memory_space<vmem>>, vector<8x8xbf16>
    %c0_1 = arith.constant 0 : index
    %c0_2 = arith.constant 0 : index
    %1 = vector.load %arg2[%c0_1, %c0_2] : memref<8x128xbf16, #tpu.memory_space<vmem>>, vector<8x128xbf16>
    %c0_3 = arith.constant 0 : index
    %c0_4 = arith.constant 0 : index
    %2 = vector.load %arg3[%c0_3, %c0_4] : memref<128x128xbf16, #tpu.memory_space<vmem>>, vector<128x128xbf16>
    %cst = arith.constant dense<0.000000e+00> : vector<8x128xf32>
    %3 = tpu.matmul %1, %2, %cst {dimension_numbers = #tpu.dot_dimension_numbers<[1], [0], [0], [1], [0, 0, 1, 1], [], []>} : vector<8x128xbf16>, vector<128x128xbf16>, vector<8x128xf32> -> vector<8x128xf32>
    %4 = arith.truncf %3 : vector<8x128xf32> to vector<8x128xbf16>
    %cst_5 = arith.constant dense<0.000000e+00> : vector<8x128xf32>
    %5 = tpu.matmul %0, %4, %cst_5 {dimension_numbers = #tpu.dot_dimension_numbers<[1], [0], [0], [1], [0, 0, 1, 1], [], []>} : vector<8x8xbf16>, vector<8x128xbf16>, vector<8x128xf32> -> vector<8x128xf32>
    %cst_6 = arith.constant 0.000000e+00 : f32
    %6 = vector.broadcast %cst_6 : f32 to vector<8x128xf32>
    %7 = arith.cmpf oge, %5, %6 : vector<8x128xf32>
    %cst_7 = arith.constant 0.00999999977 : f32
    %8 = vector.broadcast %cst_7 : f32 to vector<8x128xf32>
    %9 = arith.mulf %8, %5 : vector<8x128xf32>
    %10 = arith.select %7, %5, %9 : vector<8x128xi1>, vector<8x128xf32>
    %11 = arith.truncf %10 : vector<8x128xf32> to vector<8x128xbf16>
    %c0_8 = arith.constant 0 : index
    %c0_9 = arith.constant 0 : index
    %12 = vector.load %arg4[%c0_8, %c0_9] : memref<128x128xbf16, #tpu.memory_space<vmem>>, vector<128x128xbf16>
    %cst_10 = arith.constant dense<0.000000e+00> : vector<8x128xf32>
    %13 = tpu.matmul %11, %12, %cst_10 {dimension_numbers = #tpu.dot_dimension_numbers<[1], [0], [0], [1], [0, 0, 1, 1], [], []>} : vector<8x128xbf16>, vector<128x128xbf16>, vector<8x128xf32> -> vector<8x128xf32>
    %14 = arith.truncf %13 : vector<8x128xf32> to vector<8x128xbf16>
    %cst_11 = arith.constant dense<0.000000e+00> : vector<8x128xf32>
    %15 = tpu.matmul %0, %14, %cst_11 {dimension_numbers = #tpu.dot_dimension_numbers<[1], [0], [0], [1], [0, 0, 1, 1], [], []>} : vector<8x8xbf16>, vector<8x128xbf16>, vector<8x128xf32> -> vector<8x128xf32>
    %cst_12 = arith.constant 0.000000e+00 : f32
    %16 = vector.broadcast %cst_12 : f32 to vector<8x128xf32>
    %17 = arith.cmpf oge, %15, %16 : vector<8x128xf32>
    %cst_13 = arith.constant 0.00999999977 : f32
    %18 = vector.broadcast %cst_13 : f32 to vector<8x128xf32>
    %19 = arith.mulf %18, %15 : vector<8x128xf32>
    %20 = arith.select %17, %15, %19 : vector<8x128xi1>, vector<8x128xf32>
    %21 = arith.truncf %20 : vector<8x128xf32> to vector<8x128xbf16>
    %c0_14 = arith.constant 0 : index
    %c0_15 = arith.constant 0 : index
    %22 = vector.load %arg5[%c0_14, %c0_15] : memref<128x128xbf16, #tpu.memory_space<vmem>>, vector<128x128xbf16>
    %cst_16 = arith.constant dense<0.000000e+00> : vector<8x128xf32>
    %23 = tpu.matmul %21, %22, %cst_16 {dimension_numbers = #tpu.dot_dimension_numbers<[1], [0], [0], [1], [0, 0, 1, 1], [], []>} : vector<8x128xbf16>, vector<128x128xbf16>, vector<8x128xf32> -> vector<8x128xf32>
    %24 = arith.truncf %23 : vector<8x128xf32> to vector<8x128xbf16>
    %cst_17 = arith.constant dense<0.000000e+00> : vector<8x128xf32>
    %25 = tpu.matmul %0, %24, %cst_17 {dimension_numbers = #tpu.dot_dimension_numbers<[1], [0], [0], [1], [0, 0, 1, 1], [], []>} : vector<8x8xbf16>, vector<8x128xbf16>, vector<8x128xf32> -> vector<8x128xf32>
    %cst_18 = arith.constant 0.000000e+00 : f32
    %26 = vector.broadcast %cst_18 : f32 to vector<8x128xf32>
    %27 = arith.cmpf oge, %25, %26 : vector<8x128xf32>
    %cst_19 = arith.constant 0.00999999977 : f32
    %28 = vector.broadcast %cst_19 : f32 to vector<8x128xf32>
    %29 = arith.mulf %28, %25 : vector<8x128xf32>
    %30 = arith.select %27, %25, %29 : vector<8x128xi1>, vector<8x128xf32>
    %c0_20 = arith.constant 0 : index
    %c0_21 = arith.constant 0 : index
    %31 = vector.load %arg6[%c0_20, %c0_21] : memref<8x128xf32, #tpu.memory_space<vmem>>, vector<8x128xf32>
    tpu.vector_store %arg6[%c0_20, %c0_21], %30 {strides = array<i32>} : memref<8x128xf32, #tpu.memory_space<vmem>>, vector<8x128xf32>,
    return
  }
  func.func @transform_0(%arg0: i32) -> (i32, i32) {
    %c0_i32 = arith.constant 0 : i32
    %c0_i32_0 = arith.constant 0 : i32
    %c0_i32_1 = arith.constant 0 : i32
    return %c0_i32, %c0_i32_0 : i32, i32
  }
  func.func @transform_1(%arg0: i32) -> (i32, i32) {
    %c0_i32 = arith.constant 0 : i32
    %c0_i32_0 = arith.constant 0 : i32
    %c0_i32_1 = arith.constant 0 : i32
    return %c0_i32, %c0_i32_0 : i32, i32
  }
  func.func @transform_2(%arg0: i32) -> (i32, i32) {
    %c0_i32 = arith.constant 0 : i32
    %c0_i32_0 = arith.constant 0 : i32
    %c0_i32_1 = arith.constant 0 : i32
    return %c0_i32, %c0_i32_0 : i32, i32
  }
  func.func @transform_3(%arg0: i32) -> (i32, i32) {
    %c0_i32 = arith.constant 0 : i32
    %c0_i32_0 = arith.constant 0 : i32
    %c0_i32_1 = arith.constant 0 : i32
    return %c0_i32, %c0_i32_0 : i32, i32
  }
  func.func @transform_4(%arg0: i32) -> (i32, i32) {
    %c0_i32 = arith.constant 0 : i32
    %c0_i32_0 = arith.constant 0 : i32
    %c0_i32_1 = arith.constant 0 : i32
    return %c0_i32, %c0_i32_0 : i32, i32
  }
  func.func @transform_5(%arg0: i32) -> (i32, i32) {
    %c0_i32 = arith.constant 0 : i32
    %c0_i32_0 = arith.constant 0 : i32
    %c0_i32_1 = arith.constant 0 : i32
    return %c0_i32, %c0_i32_0 : i32, i32
  }
}

</mosaic_0001>

<bundles_post_ra>
// kernel: tpu_custom_call.1
= control target key start
LH: loop header
LB: loop body
LE: loop exit
PB: predicated region body
PF: predicated region fallthrough
CT: control target
= control target key end

     0   :  { %10 = vsyncpa [#allocation3], 0  ;;  %s983_s0 = inlined_call_operand.hbm [shape: bf16[8,8], index: 0, kind: input, shape index: {}]   ;;  %s984_s1 = inlined_call_operand.hbm [shape: bf16[8,128], index: 1, kind: input, shape index: {}]   ;;  %s985_s2 = inlined_call_operand.hbm [shape: bf16[128,128], index: 2, kind: input, shape index: {}]   ;;  %s986_s3 = inlined_call_operand.hbm [shape: bf16[128,128], index: 3, kind: input, shape index: {}]   ;;  %s987_s4 = inlined_call_operand.hbm [shape: bf16[128,128], index: 4, kind: input, shape index: {}]   ;;  %s988_s5 = inlined_call_operand.hbm [shape: f32[8,128], index: 5, kind: output, shape index: {}]  }
   0x1   :  { %11 = vsyncpa [#allocation6], 0 }
   0x2   :  { %12 = vsyncpa [#allocation9], 0 }
   0x3   :  { %13 = vsyncpa [#allocation4], 0  ;;  %s866_s18 = smov [#allocation5]  }
   0x4   :  { %s30_s19 = sshll.u32 %s866_s18, 4  ;;  %s31_s19 = int_to_ptr.vmem [resolvable:$true] %s30_s19 }
   0x5   :  { %s746_s20 = scalar_lea.vmem %s31_s19, 64  ;;  %p751_p1 = scmp.lt.s32.totalorder %s31_s19, %s31_s19 }
   0x6   :  { %p747_p0 = scmp.ne.s32.totalorder %s31_s19, %s746_s20  ;;  %p752_p2 = scmp.lt.s32.totalorder %s746_s20, %s746_s20 }
   0x8   :  { %p753_p3 = por %p752_p2, %p751_p1 }
   0xa   :  { %p754_p4 = pnand %p753_p3, %p747_p0 }
   0xc   :  { %757 = shalt.err (!%p754_p4)
}
   0xd   :  { %33 = dma.hbm_to_vmem [thread:$0]  %s984_s1, 64, %s31_s19, [#allocation6]  }
   0xe   :  { %s867_s23 = smov [#allocation8]   ;;  %s868_s25 = smov [#allocation2]  }
   0xf   :  { %s51_s24 = sshll.u32 %s867_s23, 4  ;;  %s20_s26 = sshll.u32 %s868_s25, 4  ;;  %s52_s24 = int_to_ptr.vmem [resolvable:$true] %s51_s24  ;;  %s21_s26 = int_to_ptr.vmem [resolvable:$true] %s20_s26 }
  0x10   :  { %s766_s27 = scalar_lea.vmem %s52_s24, 1024  ;;  %p771_p6 = scmp.lt.s32.totalorder %s52_s24, %s52_s24 }
  0x11   :  { %p767_p5 = scmp.ne.s32.totalorder %s52_s24, %s766_s27  ;;  %p772_p7 = scmp.lt.s32.totalorder %s766_s27, %s766_s27 }
  0x13   :  { %p773_p8 = por %p772_p7, %p771_p6 }
  0x15   :  { %p774_p9 = pnand %p773_p8, %p767_p5 }
  0x17   :  { %777 = shalt.err (!%p774_p9)
}
  0x18   :  { %s869_s28 = smov 64   ;;  %s870_s29 = smov 4  }
  0x19   :  { %57 = dma.hbm_to_vmem [thread:$0]  %s986_s3, 1024, %s52_s24, [#allocation9], %s869_s28, %s869_s28, %s870_s29  }
  0x1a   :  { %s786_s1 = scalar_lea.vmem %s21_s26, 64  ;;  %p791_p11 = scmp.lt.s32.totalorder %s21_s26, %s21_s26 }
  0x1b   :  { %p787_p10 = scmp.ne.s32.totalorder %s21_s26, %s786_s1  ;;  %p792_p12 = scmp.lt.s32.totalorder %s786_s1, %s786_s1 }
  0x1d   :  { %p793_p13 = por %p792_p12, %p791_p11 }
  0x1f   :  { %p794_p0 = pnand %p793_p13, %p787_p10 }
  0x21   :  { %797 = shalt.err (!%p794_p0)
}
  0x22   :  { %23 = dma.hbm_to_vmem [thread:$0]  %s983_s0, 64, %s21_s26, [#allocation3]  }
  0x23   :  { %s871_s9 = smov [#allocation7]   ;;  %s872_s11 = smov [#allocation10]  }
  0x24   :  { %s39_s10 = sshll.u32 %s871_s9, 4  ;;  %s63_s12 = sshll.u32 %s872_s11, 4  ;;  %s40_s10 = int_to_ptr.vmem [resolvable:$true] %s39_s10  ;;  %s64_s12 = int_to_ptr.vmem [resolvable:$true] %s63_s12 }
  0x25   :  { %s806_s13 = scalar_lea.vmem %s40_s10, 1024  ;;  %p811_p2 = scmp.lt.s32.totalorder %s40_s10, %s40_s10 }
  0x26   :  { %p807_p1 = scmp.ne.s32.totalorder %s40_s10, %s806_s13  ;;  %p812_p3 = scmp.lt.s32.totalorder %s806_s13, %s806_s13 }
  0x28   :  { %p813_p4 = por %p812_p3, %p811_p2 }
  0x2a   :  { %p814_p5 = pnand %p813_p4, %p807_p1 }
  0x2c   :  { %817 = shalt.err (!%p814_p5)
}
  0x2d   :  { %45 = dma.hbm_to_vmem [thread:$0]  %s985_s2, 1024, %s40_s10, [#allocation6], %s869_s28, %s869_s28, %s870_s29  }
  0x2e   :  { %s826_s0 = scalar_lea.vmem %s64_s12, 1024  ;;  %p831_p7 = scmp.lt.s32.totalorder %s64_s12, %s64_s12 }
  0x2f   :  { %p827_p6 = scmp.ne.s32.totalorder %s64_s12, %s826_s0  ;;  %p832_p8 = scmp.lt.s32.totalorder %s826_s0, %s826_s0 }
  0x31   :  { %p833_p9 = por %p832_p8, %p831_p7 }
  0x33   :  { %p834_p10 = pnand %p833_p9, %p827_p6 }
  0x35   :  { %837 = shalt.err (!%p834_p10)
}
  0x36   :  { %69 = dma.hbm_to_vmem [thread:$0]  %s987_s4, 1024, %s64_s12, [#allocation9], %s869_s28, %s869_s28, %s870_s29  }
  0x37   :  { %858 = dma.done.wait [#allocation3], 64  }
  0x38   :  { %859 = vsyncadd [#allocation3], 4294967232 }
  0x39   :  { %860 = dma.done.wait [#allocation6], 1088  }
  0x3a   :  { %861 = vsyncadd [#allocation6], 4294966208 }
  0x3b   :  { %862 = dma.done.wait [#allocation9], 2048  }
  0x3c   :  { %863 = vsyncadd [#allocation9], 4294965248  ;;  %v873_v0 = vmov 0.0   ;;  %vm874_vm0 = vmmov 0   ;;  %v714_v1 = vld [vmem:[#allocation7 + $0x38] sm:$0xff]   ;;  %v715_v2 = vld [vmem:[#allocation7 + $0x30] sm:$0xff]  }
  0x3d   :  { %626 = vmatprep.subr.bf16.mxu0 %v873_v0  ;;  %642 = vmatprep.mubr.msk.bf16.mxu0 %vm874_vm0, %v873_v0  ;;  %v716_v3 = vld [vmem:[#allocation7 + $0x28] sm:$0xff]   ;;  %v717_v4 = vld [vmem:[#allocation7 + $0x20] sm:$0xff]   ;;  %v718_v5 = vld [vmem:[#allocation7 + $0x18] sm:$0xff]   ;;  %vm197_vm1 = vcmask 1043456   ;;  %vm193_vm2 = vcmask 64512   ;;  %s875_s2 = smov [#allocation11]  }
  0x3e   :  { %652 = vmatprep.subr.bf16.mxu1 %v873_v0  ;;  %668 = vmatprep.mubr.msk.bf16.mxu1 %vm874_vm0, %v873_v0  ;;  %v719_v6 = vld [vmem:[#allocation7 + $0x10] sm:$0xff]   ;;  %v720_v7 = vld [vmem:[#allocation7 + $0x8] sm:$0xff]   ;;  %v721_v8 = vld [vmem:[#allocation7] sm:$0xff]   ;;  %s555_s4 = sshll.u32 %s875_s2, 4  ;;  %s556_s4 = int_to_ptr.vmem [resolvable:$true] %s555_s4 }
  0x3f   :  { %627 = vmatpush3.bf16.msra.mxu0 %v714_v1  ;;  %v87_v9 = vld [vmem:[#allocation5] sm:$0xf]  ;;  %v723_v11 = vld [vmem:[#allocation8 + $0x30] sm:$0xff]   ;;  %v724_v12 = vld [vmem:[#allocation8 + $0x28] sm:$0xff]   ;;  %s838_s17 = scalar_lea.vmem %s556_s4, 128  ;;  %p843_p12 = scmp.lt.s32.totalorder %s556_s4, %s556_s4 }
  0x40   :  { %628 = vmatprep.subr.bf16.mxu0 %v873_v0  ;;  %v722_v10 = vld [vmem:[#allocation8 + $0x38] sm:$0xff]   ;;  %v725_v13 = vld [vmem:[#allocation8 + $0x20] sm:$0xff]   ;;  %v727_v15 = vld [vmem:[#allocation8 + $0x10] sm:$0xff]   ;;  %p839_p11 = scmp.ne.s32.totalorder %s556_s4, %s838_s17  ;;  %p844_p13 = scmp.lt.s32.totalorder %s838_s17, %s838_s17 }
  0x41   :  { %653 = vmatpush3.bf16.msra.mxu1 %v722_v10  ;;  %v726_v14 = vld [vmem:[#allocation8 + $0x18] sm:$0xff]   ;;  %v728_v16 = vld [vmem:[#allocation8 + $0x8] sm:$0xff]   ;;  %v729_v24 = vld [vmem:[#allocation8] sm:$0xff]  }
  0x42   :  { %654 = vmatprep.subr.bf16.mxu1 %v873_v0  ;;  %v954_v22 = vld [vmem:[#allocation2] sm:$0xf]  ;;  %v731_v33 = vld [vmem:[#allocation10 + $0x30] sm:$0xff]   ;;  %v732_v34 = vld [vmem:[#allocation10 + $0x28] sm:$0xff]   ;;  %p845_p0 = por %p844_p13, %p843_p12 }
  0x43   :  { %629 = vmatpush3.bf16.msra.mxu0 %v715_v2  ;;  %v730_v32 = vld [vmem:[#allocation10 + $0x38] sm:$0xff]   ;;  %v733_v35 = vld [vmem:[#allocation10 + $0x20] sm:$0xff]   ;;  %v735_v37 = vld [vmem:[#allocation10 + $0x10] sm:$0xff]  }
  0x44   :  { %630 = vmatprep.subr.bf16.mxu0 %v873_v0  ;;  %v734_v36 = vld [vmem:[#allocation10 + $0x18] sm:$0xff]   ;;  %v736_v38 = vld [vmem:[#allocation10 + $0x8] sm:$0xff]   ;;  %v737_v45 = vld [vmem:[#allocation10] sm:$0xff]   ;;  %p846_p1 = pnand %p845_p0, %p839_p11 }
  0x45   :  { %655 = vmatpush3.bf16.msra.mxu1 %v723_v11 }
  0x46   :  { %656 = vmatprep.subr.bf16.mxu1 %v873_v0 }
  0x47   :  { %631 = vmatpush3.bf16.msra.mxu0 %v716_v3 }
  0x48   :  { %632 = vmatprep.subr.bf16.mxu0 %v873_v0 }
  0x49   :  { %657 = vmatpush3.bf16.msra.mxu1 %v724_v12 }
  0x4a   :  { %658 = vmatprep.subr.bf16.mxu1 %v873_v0 }
  0x4b   :  { %633 = vmatpush3.bf16.msra.mxu0 %v717_v4 }
  0x4c   :  { %634 = vmatprep.subr.bf16.mxu0 %v873_v0 }
  0x4d   :  { %659 = vmatpush3.bf16.msra.mxu1 %v725_v13 }
  0x4e   :  { %660 = vmatprep.subr.bf16.mxu1 %v873_v0 }
  0x4f   :  { %635 = vmatpush3.bf16.msra.mxu0 %v718_v5 }
  0x50   :  { %636 = vmatprep.subr.bf16.mxu0 %v873_v0 }
  0x51   :  { %661 = vmatpush3.bf16.msra.mxu1 %v726_v14 }
  0x52   :  { %662 = vmatprep.subr.bf16.mxu1 %v873_v0 }
  0x53   :  { %637 = vmatpush3.bf16.msra.mxu0 %v719_v6 }
  0x54   :  { %638 = vmatprep.subr.bf16.mxu0 %v873_v0 }
  0x55   :  { %663 = vmatpush3.bf16.msra.mxu1 %v727_v15 }
  0x56   :  { %664 = vmatprep.subr.bf16.mxu1 %v873_v0 }
  0x57   :  { %639 = vmatpush3.bf16.msra.mxu0 %v720_v7 }
  0x58   :  { %640 = vmatprep.subr.bf16.mxu0 %v873_v0 }
  0x59   :  { %665 = vmatpush3.bf16.msra.mxu1 %v728_v16 }
  0x5a   :  { %666 = vmatprep.subr.bf16.mxu1 %v873_v0 }
  0x5b   :  { %641 = vmatpush3.bf16.msra.mxu0 %v721_v8 }
  0x5c   :  { %646 = vmatprep.subr.bf16.mxu0 %v873_v0 }
  0x5d   :  { %667 = vmatpush3.bf16.msra.mxu1 %v729_v24 }
  0x5e   :  { %643 = vmatmul.mubr.bf16.vlgmr.msra.gmra.mxu0 %v87_v9  ;;  %678 = vmatprep.subr.bf16.mxu1 %v873_v0 }
  0x5f   :  { %648 = vmatprep.mubr.msk.bf16.mxu0 %vm874_vm0, %v873_v0 }
 0x11e   :  { %v186_v17 = vpop.f32.mrf.mxu0 }
 0x11f   :  { %v192_v18 = vpack.c.bf16 %v186_v17, %v186_v17 }
 0x120   :  { %v644_v19 = vpop.f32.mrf.mxu0 }
 0x121   :  { %v199_v20 = vsel %vm197_vm1, %v192_v18, 0 }
 0x122   :  { %v189_v21 = vpop.f32.mrf.mxu0  ;;  %647 = vmatpush3.bf16.msra.mxu0 %v199_v20 }
 0x123   :  { %672 = vmatprep.subr.bf16.mxu0 %v873_v0 }
 0x124   :  { %v645_v23 = vpop.f32.mrf.mxu0 }
 0x125   :  { %649 = vmatmul.mubr.msk.bf16.vlgmr.msra.gmra.mxu0 %vm193_vm2, %v954_v22 }
 0x126   :  { %674 = vmatprep.mubr.msk.bf16.mxu0 %vm874_vm0, %v873_v0 }
 0x1e5   :  { %v235_v25 = vpop.f32.mrf.mxu0 }
 0x1e6   :  { %vm241_vm3 = vcmp.ge.f32.partialorder %v235_v25, 0.0  ;;  %v242_v26 = vmul.f32 0.01, %v235_v25 }
 0x1e7   :  { %v650_v27 = vpop.f32.mrf.mxu0 }
 0x1e8   :  { %v243_v28 = vsel %vm241_vm3, %v235_v25, %v242_v26 }
 0x1e9   :  { %v244_v29 = vpack.c.bf16 %v243_v28, %v243_v28  ;;  %v238_v30 = vpop.f32.mrf.mxu0 }
 0x1eb   :  { %v651_v31 = vpop.f32.mrf.mxu0  ;;  %669 = vmatmul.mubr.bf16.vlgmr.msra.gmra.mxu1 %v244_v29 }
 0x1ec   :  { %694 = vmatprep.mubr.msk.bf16.mxu1 %vm874_vm0, %v873_v0  ;;  %679 = vmatpush3.bf16.msra.mxu1 %v730_v32 }
 0x1ed   :  { %680 = vmatprep.subr.bf16.mxu1 %v873_v0 }
 0x1f0   :  { %681 = vmatpush3.bf16.msra.mxu1 %v731_v33 }
 0x1f1   :  { %682 = vmatprep.subr.bf16.mxu1 %v873_v0 }
 0x1f4   :  { %683 = vmatpush3.bf16.msra.mxu1 %v732_v34 }
 0x1f5   :  { %684 = vmatprep.subr.bf16.mxu1 %v873_v0 }
 0x1f8   :  { %685 = vmatpush3.bf16.msra.mxu1 %v733_v35 }
 0x1f9   :  { %686 = vmatprep.subr.bf16.mxu1 %v873_v0 }
 0x1fc   :  { %687 = vmatpush3.bf16.msra.mxu1 %v734_v36 }
 0x1fd   :  { %688 = vmatprep.subr.bf16.mxu1 %v873_v0 }
 0x200   :  { %689 = vmatpush3.bf16.msra.mxu1 %v735_v37 }
 0x201   :  { %690 = vmatprep.subr.bf16.mxu1 %v873_v0 }
 0x204   :  { %691 = vmatpush3.bf16.msra.mxu1 %v736_v38 }
 0x205   :  { %692 = vmatprep.subr.bf16.mxu1 %v873_v0 }
 0x208   :  { %693 = vmatpush3.bf16.msra.mxu1 %v737_v45 }
 0x2ab   :  { %v343_v39 = vpop.f32.mrf.mxu1 }
 0x2ac   :  { %v349_v40 = vpack.c.bf16 %v343_v39, %v343_v39 }
 0x2ad   :  { %v670_v41 = vpop.f32.mrf.mxu1 }
 0x2ae   :  { %v351_v42 = vsel %vm197_vm1, %v349_v40, 0 }
 0x2af   :  { %v346_v43 = vpop.f32.mrf.mxu1  ;;  %673 = vmatpush3.bf16.msra.mxu0 %v351_v42 }
 0x2b0   :  { %698 = vmatprep.subr.bf16.mxu0 %v873_v0 }
 0x2b1   :  { %v671_v44 = vpop.f32.mrf.mxu1 }
 0x2b2   :  { %675 = vmatmul.mubr.msk.bf16.vlgmr.msra.gmra.mxu0 %vm193_vm2, %v954_v22 }
 0x2b3   :  { %700 = vmatprep.mubr.msk.bf16.mxu0 %vm874_vm0, %v873_v0 }
 0x372   :  { %v387_v46 = vpop.f32.mrf.mxu0 }
 0x373   :  { %vm393_vm4 = vcmp.ge.f32.partialorder %v387_v46, 0.0  ;;  %v394_v47 = vmul.f32 0.01, %v387_v46 }
 0x374   :  { %v676_v48 = vpop.f32.mrf.mxu0 }
 0x375   :  { %v395_v49 = vsel %vm393_vm4, %v387_v46, %v394_v47 }
 0x376   :  { %v396_v50 = vpack.c.bf16 %v395_v49, %v395_v49  ;;  %v390_v51 = vpop.f32.mrf.mxu0 }
 0x378   :  { %v677_v52 = vpop.f32.mrf.mxu0  ;;  %695 = vmatmul.mubr.bf16.vlgmr.msra.gmra.mxu1 %v396_v50 }
 0x438   :  { %v495_v53 = vpop.f32.mrf.mxu1 }
 0x439   :  { %v501_v54 = vpack.c.bf16 %v495_v53, %v495_v53 }
 0x43a   :  { %v696_v55 = vpop.f32.mrf.mxu1 }
 0x43b   :  { %v503_v56 = vsel %vm197_vm1, %v501_v54, 0 }
 0x43c   :  { %v498_v57 = vpop.f32.mrf.mxu1  ;;  %699 = vmatpush3.bf16.msra.mxu0 %v503_v56 }
 0x43e   :  { %v697_v58 = vpop.f32.mrf.mxu1 }
 0x43f   :  { %701 = vmatmul.mubr.msk.bf16.vlgmr.msra.gmra.mxu0 %vm193_vm2, %v954_v22 }
 0x4ff   :  { %v539_v59 = vpop.f32.mrf.mxu0 }
 0x500   :  { %vm545_vm5 = vcmp.ge.f32.partialorder %v539_v59, 0.0  ;;  %v546_v60 = vmul.f32 0.01, %v539_v59 }
 0x501   :  { %v702_v61 = vpop.f32.mrf.mxu0 }
 0x502   :  { %v547_v62 = vsel %vm545_vm5, %v539_v59, %v546_v60 }
 0x503   :  { %v542_v63 = vpop.f32.mrf.mxu0  ;;  %548 = vst [vmem:[#allocation11] sm:$0xff] %v547_v62 }
 0x504   :  { %849 = shalt.err (!%p846_p1)
}
 0x505   :  { %558 = dma.vmem_to_hbm [thread:$0]  %s556_s4, 128, %s988_s5, [#allocation4]   ;;  %v703_v0 = vpop.f32.mrf.mxu0 }
 0x506   :  { %864 = dma.done.wait [#allocation4], 128  }
 0x507   :  { %865 = vsyncadd [#allocation4], 4294967168 }
 0x508   :  { %562 = vsyncpa [#allocation3], 1 }
 0x509   :  { %563 = vsyncpa [#allocation6], 1 }
 0x50a   :  { %564 = vsyncpa [#allocation9], 1 }
 0x50b   :  { %565 = vsyncpa [#allocation4], 1 }

</bundles_post_ra>
